<compile_context>
chip_gen: v7x
topology: tpu7x:2x2x1
jax: 0.10.0
libtpu: 0.0.40
codegen_flags: <defaults>
</compile_context>

<pallas_src>
import jax
import jax.numpy as jnp
from jax.experimental import pallas as pl
from jax.experimental.pallas import tpu as pltpu


_MAX_RESIDENT_TABLE_BYTES = 6 * 1024 * 1024   # conservative vs. v5e's 16 MiB scoped VMEM


def _embed_kernel(ids_ref, table_t_ref, out_ref):
    # ids_ref:     (1, TT)  int32   -- token ids for this tile (lane-dense)
    # table_t_ref: (Ep, Vp) float32 -- transposed, sublane-padded table (resident)
    # out_ref:     (Ep, TT) float32 -- transposed output slab (lane-dense stores)
    vp = table_t_ref.shape[1]
    tt = ids_ref.shape[1]
    row = jax.lax.broadcasted_iota(jnp.int32, (vp, tt), 0)        # (Vp, TT)
    onehot_t = (row == ids_ref[...]).astype(table_t_ref.dtype)    # (Vp, TT) one-hot cols
    out_ref[...] = jnp.dot(
        table_t_ref[...], onehot_t, preferred_element_type=jnp.float32
    ).astype(out_ref.dtype)


def prepare_type_embedding_table(table):
    """Hoisted out of the forward pass: pad + transpose the (V, E) table ONCE.

    Returns (table_t, emb_size) where table_t has shape (Ep, Vp) float32 with
    Ep = roundup(E, 8), Vp = roundup(V, 8). Padded rows/cols are zero and are
    never selected by in-range ids.
    """
    v, e = table.shape
    vp = max(8, pl.cdiv(v, 8) * 8)     # sublane-pad only; no forced 128 lane pad
    ep = max(8, pl.cdiv(e, 8) * 8)
    table_bytes = ep * vp * 4
    assert table_bytes <= _MAX_RESIDENT_TABLE_BYTES, (
        "embedding table too large for the resident one-hot-matmul design; "
        "use a row-gather kernel instead")
    table_t = (
        jnp.zeros((ep, vp), jnp.float32)
        .at[:e, :v]
        .set(jnp.asarray(table, jnp.float32).T)
    )
    return table_t, e


def type_embeddings_lookup(input_idx, table_t, emb_size, *,
                           token_tile=2048, min_tokens_for_kernel=4096):
    """input_idx: int array of any shape; table_t: prepared (Ep, Vp) f32 table.
    Returns float32 array of shape input_idx.shape + (emb_size,)."""
    orig_shape = input_idx.shape
    ep, vp = table_t.shape
    e = int(emb_size)

    ids_flat = input_idx.reshape(-1).astype(jnp.int32)
    n = ids_flat.shape[0]

    # Small-N fast path: the pallas_call launch + padding + transposes dwarf the
    # actual gather for small token counts; plain XLA gather is strictly faster.
    if n < min_tokens_for_kernel:
        out = jnp.take(table_t[:e, :], ids_flat, axis=1).T          # (N, E)
        return out.reshape(*orig_shape, e)

    # --- token tile selection --------------------------------------------
    token_tile = max(128, (int(token_tile) // 128) * 128)
    n_up = pl.cdiv(n, 128) * 128                   # minimal lane-aligned token count
    tile = min(token_tile, n_up)                   # don't over-pad smaller inputs
    # Keep >= 2 grid steps when there is enough work so ("parallel",) can split
    # token tiles across the two TensorCores on v7x.
    if n_up >= 2 * 128:
        tile = min(tile, max(128, (n_up // 2) // 128 * 128))

    n_pad = pl.cdiv(n, tile) * tile
    if n_pad != n:
        ids_flat = jnp.pad(ids_flat, (0, n_pad - n))   # pad with id 0 -> zero row
    ids2d = ids_flat.reshape(1, n_pad)
    grid = (n_pad // tile,)

    # --- VMEM budget / compiler params -------------------------------------
    table_bytes = ep * vp * 4                       # single-buffered resident table
    out_tile_bytes = ep * tile * 4
    ids_tile_bytes = tile * 4
    onehot_bytes = vp * tile * 4                    # in-kernel one-hot temp
    budget = (table_bytes
              + 2 * out_tile_bytes + 2 * ids_tile_bytes
              + onehot_bytes
              + (2 << 20))                          # slack for compiler scratch
    vmem_limit = min(max(budget, 16 << 20), 48 << 20)

    cost = pl.CostEstimate(
        flops=2 * n_pad * vp * ep,
        transcendentals=0,
        bytes_accessed=n_pad * 4 + table_bytes + n_pad * ep * 4,
    )

    def _call(single_buffer_table):
        if single_buffer_table:
            # Constant index map -> a second pipeline buffer is pure VMEM waste.
            table_spec = pl.BlockSpec((ep, vp), lambda i: (0, 0),
                                      pipeline_mode=pl.Buffered(1))
        else:
            table_spec = pl.BlockSpec((ep, vp), lambda i: (0, 0))
        return pl.pallas_call(
            _embed_kernel,
            out_shape=jax.ShapeDtypeStruct((ep, n_pad), jnp.float32),
            grid_spec=pltpu.PrefetchScalarGridSpec(
                num_scalar_prefetch=0,
                grid=grid,
                in_specs=[
                    pl.BlockSpec((1, tile), lambda i: (0, i)),   # lane-dense ids row
                    table_spec,                                  # resident table^T
                ],
                out_specs=pl.BlockSpec((ep, tile), lambda i: (0, i)),
            ),
            compiler_params=pltpu.CompilerParams(
                dimension_semantics=("parallel",),
                vmem_limit_bytes=vmem_limit,
            ),
            cost_estimate=cost,
        )(ids2d, table_t)

    try:
        out_t = _call(True)
    except Exception:
        # Fallback for Pallas versions without single-buffer pipeline_mode support.
        out_t = _call(False)

    out = out_t[:e, :n].T                                           # (N, E)
    return out.reshape(*orig_shape, e)


def type_embeddings_forward(input_idx, table, **kwargs):
    """Convenience one-shot forward (prefer hoisting prepare_* to init)."""
    table_t, e = prepare_type_embedding_table(table)
    return type_embeddings_lookup(input_idx, table_t, e, **kwargs)


def make_type_embedding_table(key, vocab_size, emb_size):
    """Deterministic stand-in for the module __init__: row 0 zeros, rest
    uniform(-0.25, 0.25). (read_dict / JSON type dict is file I/O -> built
    synthetically here.)"""
    rows = jax.random.uniform(
        key, (vocab_size - 1, emb_size), minval=-0.25, maxval=0.25,
        dtype=jnp.float32,
    )
    return jnp.concatenate([jnp.zeros((1, emb_size), jnp.float32), rows], axis=0)


if __name__ == "__main__":
    key = jax.random.PRNGKey(0)
    k_tab, k_idx1, k_idx2 = jax.random.split(key, 3)

    vocab_size = 12     # len(type2id) of the synthetic type dictionary
    emb_size = 32       # embeddinsg_size
    batch, seq = 2, 8

    table = make_type_embedding_table(k_tab, vocab_size, emb_size)
    table_t, e = prepare_type_embedding_table(table)     # hoisted (init-time) prep

    # 1) Small case, forced through the Pallas kernel (fast path disabled).
    idx_small = jax.random.randint(k_idx1, (batch, seq), 0, vocab_size,
                                   dtype=jnp.int32)
    out_small = type_embeddings_lookup(idx_small, table_t, e,
                                       min_tokens_for_kernel=0)
    out_small = jax.block_until_ready(out_small)
    ref_small = jnp.take(table, idx_small, axis=0)
    assert out_small.shape == (batch, seq, emb_size), out_small.shape
    assert jnp.allclose(out_small, ref_small, atol=1e-6), "small-case mismatch"

    # 2) Mid-size case exercising the multi-tile "parallel" grid + tail padding.
    idx_mid = jax.random.randint(k_idx2, (4, 300), 0, vocab_size, dtype=jnp.int32)
    out_mid = type_embeddings_lookup(idx_mid, table_t, e,
                                     min_tokens_for_kernel=0)
    out_mid = jax.block_until_ready(out_mid)
    ref_mid = jnp.take(table, idx_mid, axis=0)
    assert out_mid.shape == (4, 300, emb_size), out_mid.shape
    assert jnp.allclose(out_mid, ref_mid, atol=1e-6), "mid-case mismatch"

    # 3) Default small-N fast path (plain gather) still matches.
    out_fast = jax.block_until_ready(type_embeddings_lookup(idx_small, table_t, e))
    assert jnp.allclose(out_fast, ref_small, atol=1e-6), "fast-path mismatch"

    print("KERNEL_OK")
</pallas_src>

<mosaic_0001>
module attributes {stable_mosaic.version = 11 : i64} {
  func.func @_embed_kernel(%arg0: i32, %arg1: memref<1x128xi32, #tpu.memory_space<vmem>>, %arg2: memref<32x16xf32, #tpu.memory_space<vmem>>, %arg3: memref<32x128xf32, #tpu.memory_space<vmem>>) attributes {dimension_semantics = [#tpu.dimension_semantics<parallel>], iteration_bounds = array<i64: 1>, scalar_prefetch = 0 : i64, scratch_operands = 0 : i64, tpu.core_type = #tpu.core_type<tc>, window_params = [{transform_indices = @transform_0, window_bounds = array<i64: 1, 128>}, {pipeline_mode = #tpu.pipeline_mode<synchronous>, transform_indices = @transform_1, window_bounds = array<i64: 32, 16>}, {transform_indices = @transform_2, window_bounds = array<i64: 32, 128>}]} {
    %0 = tpu.iota {dimensions = array<i32: 0>} : vector<16x128xi32>
    %c0 = arith.constant 0 : index
    %c0_0 = arith.constant 0 : index
    %1 = vector.load %arg1[%c0, %c0_0] : memref<1x128xi32, #tpu.memory_space<vmem>>, vector<1x128xi32>
    %2 = vector.broadcast %1 : vector<1x128xi32> to vector<16x128xi32>
    %3 = arith.cmpi eq, %0, %2 : vector<16x128xi32>
    %4 = arith.extui %3 : vector<16x128xi1> to vector<16x128xi32>
    %5 = arith.sitofp %4 : vector<16x128xi32> to vector<16x128xf32>
    %c0_1 = arith.constant 0 : index
    %c0_2 = arith.constant 0 : index
    %6 = vector.load %arg2[%c0_1, %c0_2] : memref<32x16xf32, #tpu.memory_space<vmem>>, vector<32x16xf32>
    %cst = arith.constant dense<0.000000e+00> : vector<32x128xf32>
    %7 = tpu.matmul %6, %5, %cst {dimension_numbers = #tpu.dot_dimension_numbers<[1], [0], [0], [1], [0, 0, 1, 1], [], []>} : vector<32x16xf32>, vector<16x128xf32>, vector<32x128xf32> -> vector<32x128xf32>
    %c0_3 = arith.constant 0 : index
    %c0_4 = arith.constant 0 : index
    %8 = vector.load %arg3[%c0_3, %c0_4] : memref<32x128xf32, #tpu.memory_space<vmem>>, vector<32x128xf32>
    tpu.vector_store %arg3[%c0_3, %c0_4], %7 {strides = array<i32>} : memref<32x128xf32, #tpu.memory_space<vmem>>, vector<32x128xf32>,
    return
  }
  func.func @transform_0(%arg0: i32) -> (i32, i32) {
    %c0_i32 = arith.constant 0 : i32
    %c0_i32_0 = arith.constant 0 : i32
    return %c0_i32, %arg0 : i32, i32
  }
  func.func @transform_1(%arg0: i32) -> (i32, i32) {
    %c0_i32 = arith.constant 0 : i32
    %c0_i32_0 = arith.constant 0 : i32
    %c0_i32_1 = arith.constant 0 : i32
    return %c0_i32, %c0_i32_0 : i32, i32
  }
  func.func @transform_2(%arg0: i32) -> (i32, i32) {
    %c0_i32 = arith.constant 0 : i32
    %c0_i32_0 = arith.constant 0 : i32
    return %c0_i32, %arg0 : i32, i32
  }
}

module attributes {stable_mosaic.version = 11 : i64} {
  func.func @_embed_kernel(%arg0: i32, %arg1: memref<1x128xi32, #tpu.memory_space<vmem>>, %arg2: memref<32x16xf32, #tpu.memory_space<vmem>>, %arg3: memref<32x128xf32, #tpu.memory_space<vmem>>) attributes {dimension_semantics = [#tpu.dimension_semantics<parallel>], iteration_bounds = array<i64: 1>, scalar_prefetch = 0 : i64, scratch_operands = 0 : i64, tpu.core_type = #tpu.core_type<tc>, window_params = [{transform_indices = @transform_0, window_bounds = array<i64: 1, 128>}, {pipeline_mode = #tpu.pipeline_mode<synchronous>, transform_indices = @transform_1, window_bounds = array<i64: 32, 16>}, {transform_indices = @transform_2, window_bounds = array<i64: 32, 128>}]} {
    %0 = tpu.iota {dimensions = array<i32: 0>} : vector<16x128xi32>
    %c0 = arith.constant 0 : index
    %c0_0 = arith.constant 0 : index
    %1 = vector.load %arg1[%c0, %c0_0] : memref<1x128xi32, #tpu.memory_space<vmem>>, vector<1x128xi32>
    %2 = vector.broadcast %1 : vector<1x128xi32> to vector<16x128xi32>
    %3 = arith.cmpi eq, %0, %2 : vector<16x128xi32>
    %4 = arith.extui %3 : vector<16x128xi1> to vector<16x128xi32>
    %5 = arith.sitofp %4 : vector<16x128xi32> to vector<16x128xf32>
    %c0_1 = arith.constant 0 : index
    %c0_2 = arith.constant 0 : index
    %6 = vector.load %arg2[%c0_1, %c0_2] : memref<32x16xf32, #tpu.memory_space<vmem>>, vector<32x16xf32>
    %cst = arith.constant dense<0.000000e+00> : vector<32x128xf32>
    %7 = tpu.matmul %6, %5, %cst {dimension_numbers = #tpu.dot_dimension_numbers<[1], [0], [0], [1], [0, 0, 1, 1], [], []>} : vector<32x16xf32>, vector<16x128xf32>, vector<32x128xf32> -> vector<32x128xf32>
    %c0_3 = arith.constant 0 : index
    %c0_4 = arith.constant 0 : index
    %8 = vector.load %arg3[%c0_3, %c0_4] : memref<32x128xf32, #tpu.memory_space<vmem>>, vector<32x128xf32>
    tpu.vector_store %arg3[%c0_3, %c0_4], %7 {strides = array<i32>} : memref<32x128xf32, #tpu.memory_space<vmem>>, vector<32x128xf32>,
    return
  }
  func.func @transform_0(%arg0: i32) -> (i32, i32) {
    %c0_i32 = arith.constant 0 : i32
    %c0_i32_0 = arith.constant 0 : i32
    return %c0_i32, %arg0 : i32, i32
  }
  func.func @transform_1(%arg0: i32) -> (i32, i32) {
    %c0_i32 = arith.constant 0 : i32
    %c0_i32_0 = arith.constant 0 : i32
    %c0_i32_1 = arith.constant 0 : i32
    return %c0_i32, %c0_i32_0 : i32, i32
  }
  func.func @transform_2(%arg0: i32) -> (i32, i32) {
    %c0_i32 = arith.constant 0 : i32
    %c0_i32_0 = arith.constant 0 : i32
    return %c0_i32, %arg0 : i32, i32
  }
}

</mosaic_0001>

<bundles_post_ra>
// kernel: tpu_custom_call.1
= control target key start
LH: loop header
LB: loop body
LE: loop exit
PB: predicated region body
PF: predicated region fallthrough
CT: control target
= control target key end

     0   :  { %v12_v0 = vlaneseq  ;;  %vm30_vm0 = vcmask 130048   ;;  %s257_s0 = inlined_call_operand.vmem [shape: s32[1,128], index: 0, kind: input, shape index: {}]   ;;  %s258_s1 = inlined_call_operand.vmem [shape: f32[32,16], index: 1, kind: input, shape index: {}]   ;;  %s259_s2 = inlined_call_operand.hbm [shape: f32[32,128], index: 2, kind: output, shape index: {}]  }
   0x1   :  { %v26_v1 = vld [vmem:[%s258_s1] sm:$0xff]  ;;  %v28_v3 = vld [vmem:[%s258_s1 + $0x10] sm:$0xff] }
   0x2   :  { %v148_v2 = vld [vmem:[%s257_s0] ss:$0 sm:$0xff]  ;;  %167 = vmatprep.mubr.msk.f32.mxu0 %vm30_vm0, %v26_v1  ;;  %v13_v4 = vshrl.u32 %v12_v0, 7  ;;  %170 = vmatprep.mubr.msk.f32.mxu1 %vm30_vm0, %v28_v3 }
   0x3   :  { %7 = vsyncpa [#allocation3], 0  ;;  %v207_v6 = vmov 1.0|1.0   ;;  %v27_v7 = vld [vmem:[%s258_s1 + $0x8] sm:$0xff]  ;;  %v29_v8 = vld [vmem:[%s258_s1 + $0x18] sm:$0xff] }
   0x4   :  { %v14_v5 = vadd.s32 8, %v13_v4  ;;  %vm20_vm1 = vcmp.eq.s32.totalorder %v13_v4, %v148_v2  ;;  %s208_s18 = smov [#allocation2]  }
   0x5   :  { %s137_s19 = sshll.u32 %s208_s18, 4  ;;  %s138_s19 = int_to_ptr.vmem [resolvable:$true] %s137_s19 }
   0x6   :  { %vm21_vm2 = vcmp.eq.s32.totalorder %v14_v5, %v148_v2  ;;  %s183_s20 = scalar_lea.vmem %s138_s19, 512  ;;  %p188_p1 = scmp.lt.s32.totalorder %s138_s19, %s138_s19 }
   0x7   :  { %vm173_vm3 = vmpackc.low %vm21_vm2, %vm20_vm1  ;;  %p184_p0 = scmp.ne.s32.totalorder %s138_s19, %s183_s20  ;;  %p189_p2 = scmp.lt.s32.totalorder %s183_s20, %s183_s20 }
   0x8   :  { %174 = vmatprep.subr.msk.bf16.mxu0 %vm173_vm3, %v207_v6  ;;  %177 = vmatprep.subr.msk.bf16.mxu1 %vm173_vm3, %v207_v6 }
   0x9   :  { %176 = vmatpush3.bf16.msk.msra.mxu0 %vm173_vm3, %v207_v6  ;;  %178 = vmatpush3.bf16.msk.msra.mxu1 %vm173_vm3, %v207_v6  ;;  %p190_p3 = por %p189_p2, %p188_p1 }
   0xb   :  { %p191_p4 = pnand %p190_p3, %p184_p0 }
   0xc   :  { %168 = vmatmul.mubr.msk.f32.vlgmr.msra.gmra.mrb[0].mxu0 %vm30_vm0, %v27_v7  ;;  %171 = vmatmul.mubr.msk.f32.vlgmr.msra.gmra.mrb[0].mxu1 %vm30_vm0, %v29_v8 }
  0xdf   :  { %v169_v9 = vpop.f32.mrb[0].mxu0  ;;  %v172_v10 = vpop.f32.mrb[0].mxu1 }
  0xe0   :  { %129 = vst [vmem:[#allocation2 + $0x8] sm:$0xff] %v169_v9  ;;  %131 = vst [vmem:[#allocation2 + $0x18] sm:$0xff] %v172_v10  ;;  %v109_v11 = vpop.f32.mrb[1].mxu0  ;;  %v119_v12 = vpop.f32.mrb[1].mxu1 }
  0xe1   :  { %128 = vst [vmem:[#allocation2] sm:$0xff] %v109_v11  ;;  %130 = vst [vmem:[#allocation2 + $0x10] sm:$0xff] %v119_v12 }
  0xe2   :  { %194 = shalt.err (!%p191_p4)
}
  0xe3   :  { %s195_s22 = scalar_lea.hbm %s259_s2, 512 }
  0xe4   :  { %p196_p5 = scmp.ne.s32.totalorder %s259_s2, %s195_s22  ;;  %p199_p6 = scmp.lt.u32.totalorder %s195_s22, %s259_s2 }
  0xe6   :  { %p201_p7 = pnand %p199_p6, %p196_p5 }
  0xe8   :  { %204 = shalt.err (!%p201_p7)
}
  0xe9   :  { %s209_s27 = smov 128   ;;  %s210_s28 = smov 8  }
  0xea   :  { %143 = dma.vmem_to_hbm [thread:$0]  %s138_s19, 512, %s259_s2, [#allocation3], %s209_s27, %s209_s27, %s210_s28  }
  0xeb   :  { %205 = dma.done.wait [#allocation3], 512  }
  0xec   :  { %206 = vsyncadd [#allocation3], 4294966784 }
  0xed   :  { %147 = vsyncpa [#allocation3], 1 }

// kernel: tpu_custom_call.1
= control target key start
LH: loop header
LB: loop body
LE: loop exit
PB: predicated region body
PF: predicated region fallthrough
CT: control target
= control target key end

     0   :  { %v12_v0 = vlaneseq  ;;  %vm30_vm0 = vcmask 130048   ;;  %s257_s0 = inlined_call_operand.vmem [shape: s32[1,128], index: 0, kind: input, shape index: {}]   ;;  %s258_s1 = inlined_call_operand.vmem [shape: f32[32,16], index: 1, kind: input, shape index: {}]   ;;  %s259_s2 = inlined_call_operand.hbm [shape: f32[32,128], index: 2, kind: output, shape index: {}]  }
   0x1   :  { %v26_v1 = vld [vmem:[%s258_s1] sm:$0xff]  ;;  %v28_v3 = vld [vmem:[%s258_s1 + $0x10] sm:$0xff] }
   0x2   :  { %v148_v2 = vld [vmem:[%s257_s0] ss:$0 sm:$0xff]  ;;  %167 = vmatprep.mubr.msk.f32.mxu0 %vm30_vm0, %v26_v1  ;;  %v13_v4 = vshrl.u32 %v12_v0, 7  ;;  %170 = vmatprep.mubr.msk.f32.mxu1 %vm30_vm0, %v28_v3 }
   0x3   :  { %7 = vsyncpa [#allocation3], 0  ;;  %v207_v6 = vmov 1.0|1.0   ;;  %v27_v7 = vld [vmem:[%s258_s1 + $0x8] sm:$0xff]  ;;  %v29_v8 = vld [vmem:[%s258_s1 + $0x18] sm:$0xff] }
   0x4   :  { %v14_v5 = vadd.s32 8, %v13_v4  ;;  %vm20_vm1 = vcmp.eq.s32.totalorder %v13_v4, %v148_v2  ;;  %s208_s18 = smov [#allocation2]  }
   0x5   :  { %s137_s19 = sshll.u32 %s208_s18, 4  ;;  %s138_s19 = int_to_ptr.vmem [resolvable:$true] %s137_s19 }
   0x6   :  { %vm21_vm2 = vcmp.eq.s32.totalorder %v14_v5, %v148_v2  ;;  %s183_s20 = scalar_lea.vmem %s138_s19, 512  ;;  %p188_p1 = scmp.lt.s32.totalorder %s138_s19, %s138_s19 }
   0x7   :  { %vm173_vm3 = vmpackc.low %vm21_vm2, %vm20_vm1  ;;  %p184_p0 = scmp.ne.s32.totalorder %s138_s19, %s183_s20  ;;  %p189_p2 = scmp.lt.s32.totalorder %s183_s20, %s183_s20 }
   0x8   :  { %174 = vmatprep.subr.msk.bf16.mxu0 %vm173_vm3, %v207_v6  ;;  %177 = vmatprep.subr.msk.bf16.mxu1 %vm173_vm3, %v207_v6 }
   0x9   :  { %176 = vmatpush3.bf16.msk.msra.mxu0 %vm173_vm3, %v207_v6  ;;  %178 = vmatpush3.bf16.msk.msra.mxu1 %vm173_vm3, %v207_v6  ;;  %p190_p3 = por %p189_p2, %p188_p1 }
   0xb   :  { %p191_p4 = pnand %p190_p3, %p184_p0 }
   0xc   :  { %168 = vmatmul.mubr.msk.f32.vlgmr.msra.gmra.mrb[0].mxu0 %vm30_vm0, %v27_v7  ;;  %171 = vmatmul.mubr.msk.f32.vlgmr.msra.gmra.mrb[0].mxu1 %vm30_vm0, %v29_v8 }
  0xdf   :  { %v169_v9 = vpop.f32.mrb[0].mxu0  ;;  %v172_v10 = vpop.f32.mrb[0].mxu1 }
  0xe0   :  { %129 = vst [vmem:[#allocation2 + $0x8] sm:$0xff] %v169_v9  ;;  %131 = vst [vmem:[#allocation2 + $0x18] sm:$0xff] %v172_v10  ;;  %v109_v11 = vpop.f32.mrb[1].mxu0  ;;  %v119_v12 = vpop.f32.mrb[1].mxu1 }
  0xe1   :  { %128 = vst [vmem:[#allocation2] sm:$0xff] %v109_v11  ;;  %130 = vst [vmem:[#allocation2 + $0x10] sm:$0xff] %v119_v12 }
  0xe2   :  { %194 = shalt.err (!%p191_p4)
}
  0xe3   :  { %s195_s22 = scalar_lea.hbm %s259_s2, 512 }
  0xe4   :  { %p196_p5 = scmp.ne.s32.totalorder %s259_s2, %s195_s22  ;;  %p199_p6 = scmp.lt.u32.totalorder %s195_s22, %s259_s2 }
  0xe6   :  { %p201_p7 = pnand %p199_p6, %p196_p5 }
  0xe8   :  { %204 = shalt.err (!%p201_p7)
}
  0xe9   :  { %s209_s27 = smov 128   ;;  %s210_s28 = smov 8  }
  0xea   :  { %143 = dma.vmem_to_hbm [thread:$0]  %s138_s19, 512, %s259_s2, [#allocation3], %s209_s27, %s209_s27, %s210_s28  }
  0xeb   :  { %205 = dma.done.wait [#allocation3], 512  }
  0xec   :  { %206 = vsyncadd [#allocation3], 4294966784 }
  0xed   :  { %147 = vsyncpa [#allocation3], 1 }

</bundles_post_ra>
